<compile_context>
chip_gen: v7x
topology: tpu7x:2x2x1
jax: 0.10.0
libtpu: 0.0.40
codegen_flags: <defaults>
</compile_context>

<pallas_src>
import jax
import jax.numpy as jnp
from jax.experimental import pallas as pl
from jax.experimental.pallas import tpu as pltpu

INPUT_DIM = 512 + 10 + 3    # 525
K_PAD = 640                 # 525 padded up to a multiple of 128 (zero-filled)
H1 = 256
H2 = 128
OUT = 2
OUT_PAD = 128               # lane-dense padded output width
TILE_B_DEFAULT = 1024       # batch rows per grid step

COMPUTE_DTYPE = jnp.bfloat16


def _round_up(n, m):
    return ((n + m - 1) // m) * m


def attack_mlp_kernel(x_ref, w1_ref, b1_ref, w2_ref, b2_ref, w3_ref, b3_ref, o_ref):
    # Layer 1: Linear(640(=525 padded) -> 256) + ReLU   (bf16 MXU, f32 accumulate)
    h1 = jnp.dot(x_ref[...], w1_ref[...], preferred_element_type=jnp.float32)
    h1 = jnp.maximum(h1 + b1_ref[...], 0.0)
    # Dropout(0.4): identity in eval mode.

    # Layer 2: Linear(256 -> 128) + ReLU
    h2 = jnp.dot(h1.astype(w2_ref.dtype), w2_ref[...],
                 preferred_element_type=jnp.float32)
    h2 = jnp.maximum(h2 + b2_ref[...], 0.0)
    # Dropout(0.4): identity in eval mode.

    # Layer 3: Linear(128 -> 128 padded; only first 2 lanes are real logits)
    o = jnp.dot(h2.astype(w3_ref.dtype), w3_ref[...],
                preferred_element_type=jnp.float32)
    o_ref[...] = (o + b3_ref[...]).astype(o_ref.dtype)


def attack_model_forward(x, params, tile_b=TILE_B_DEFAULT):
    """x: (B, 525) float32. params: dict of w1,b1,w2,b2,w3,b3 (f32, (in,out) layout)."""
    B = x.shape[0]

    # Batch tile: multiple of 16 (bf16 sublane packing), capped by the requested tile.
    tile_b = min(tile_b, _round_up(B, 16))
    B_pad = _round_up(B, tile_b)

    # --- host-side layout prep (zero padding is semantics-preserving) ---
    # x: (B,525) f32 -> (B_pad, 640) bf16
    xp = jnp.zeros((B_pad, K_PAD), COMPUTE_DTYPE)
    xp = xp.at[:B, :INPUT_DIM].set(x.astype(COMPUTE_DTYPE))

    # w1: pad contraction dim with zero rows; cast to bf16
    w1 = jnp.zeros((K_PAD, H1), COMPUTE_DTYPE)
    w1 = w1.at[:INPUT_DIM, :].set(params["w1"].astype(COMPUTE_DTYPE))
    b1 = params["b1"].astype(jnp.float32).reshape(1, H1)

    w2 = params["w2"].astype(COMPUTE_DTYPE)
    b2 = params["b2"].astype(jnp.float32).reshape(1, H2)

    # w3/b3: pad output dim 2 -> 128 so stores are full-lane vst, not masked
    w3 = jnp.zeros((H2, OUT_PAD), COMPUTE_DTYPE)
    w3 = w3.at[:, :OUT].set(params["w3"].astype(COMPUTE_DTYPE))
    b3 = jnp.zeros((1, OUT_PAD), jnp.float32)
    b3 = b3.at[:, :OUT].set(params["b3"].astype(jnp.float32).reshape(1, OUT))

    grid = (B_pad // tile_b,)

    flops = 2 * B_pad * (K_PAD * H1 + H1 * H2 + H2 * OUT_PAD)
    bytes_accessed = (
        B_pad * K_PAD * 2                                   # streamed bf16 input
        + (w1.size + w2.size + w3.size) * 2                 # resident bf16 weights
        + (b1.size + b2.size + b3.size) * 4                 # f32 biases
        + B_pad * OUT_PAD * 4                               # f32 output
    )

    out_padded = pl.pallas_call(
        attack_mlp_kernel,
        out_shape=jax.ShapeDtypeStruct((B_pad, OUT_PAD), jnp.float32),
        grid=grid,
        in_specs=[
            pl.BlockSpec((tile_b, K_PAD), lambda i: (i, 0)),   # x: streams per tile
            pl.BlockSpec((K_PAD, H1),     lambda i: (0, 0)),   # w1: VMEM-resident
            pl.BlockSpec((1, H1),         lambda i: (0, 0)),   # b1
            pl.BlockSpec((H1, H2),        lambda i: (0, 0)),   # w2
            pl.BlockSpec((1, H2),         lambda i: (0, 0)),   # b2
            pl.BlockSpec((H2, OUT_PAD),   lambda i: (0, 0)),   # w3 (padded)
            pl.BlockSpec((1, OUT_PAD),    lambda i: (0, 0)),   # b3 (padded)
        ],
        out_specs=pl.BlockSpec((tile_b, OUT_PAD), lambda i: (i, 0)),
        compiler_params=pltpu.CompilerParams(
            dimension_semantics=("parallel",),    # megacore sharding on v7x
            vmem_limit_bytes=32 << 20,            # safe on v7x's 64 MiB VMEM
        ),
        cost_estimate=pl.CostEstimate(
            flops=int(flops), transcendentals=0, bytes_accessed=int(bytes_accessed)),
    )(xp, w1, b1, w2, b2, w3, b3)

    return out_padded[:B, :OUT]


def init_params(key):
    """Deterministic init mimicking PyTorch Linear defaults (uniform +-1/sqrt(fan_in))."""
    ks = jax.random.split(key, 6)

    def linear(kw, kb, fan_in, fan_out):
        bound = 1.0 / jnp.sqrt(fan_in)
        # stored as (in, out) so kernel computes x @ W (== PyTorch x @ W.T)
        w = jax.random.uniform(kw, (fan_in, fan_out), jnp.float32, -bound, bound)
        b = jax.random.uniform(kb, (1, fan_out), jnp.float32, -bound, bound)
        return w, b

    w1, b1 = linear(ks[0], ks[1], INPUT_DIM, H1)
    w2, b2 = linear(ks[2], ks[3], H1, H2)
    w3, b3 = linear(ks[4], ks[5], H2, OUT)
    return {"w1": w1, "b1": b1, "w2": w2, "b2": b2, "w3": w3, "b3": b3}


def reference_forward(x, params):
    """Pure-JAX reference matching the kernel's numerics (bf16 operands, f32 accum,
    eval-mode dropout == identity)."""
    f32 = jnp.float32
    bf = lambda a: a.astype(jnp.bfloat16).astype(f32)
    h = jnp.maximum(bf(x) @ bf(params["w1"]) + params["b1"], 0.0)
    h = jnp.maximum(bf(h) @ bf(params["w2"]) + params["b2"], 0.0)
    return bf(h) @ bf(params["w3"]) + params["b3"]


if __name__ == "__main__":
    key = jax.random.PRNGKey(0)
    pkey, xkey = jax.random.split(key)
    params = init_params(pkey)

    B = 8  # small batch
    x = jax.random.normal(xkey, (B, INPUT_DIM), dtype=jnp.float32)

    out = attack_model_forward(x, params)
    out = jax.block_until_ready(out)
    assert out.shape == (B, OUT), out.shape

    ref = reference_forward(x, params)
    assert jnp.allclose(out, ref, atol=2e-3, rtol=2e-3), float(jnp.max(jnp.abs(out - ref)))

    print("KERNEL_OK")
</pallas_src>

<mosaic_0001>
module attributes {stable_mosaic.version = 11 : i64} {
  func.func @attack_mlp_kernel(%arg0: i32, %arg1: memref<16x640xbf16, #tpu.memory_space<vmem>>, %arg2: memref<640x256xbf16, #tpu.memory_space<vmem>>, %arg3: memref<1x256xf32, #tpu.memory_space<vmem>>, %arg4: memref<256x128xbf16, #tpu.memory_space<vmem>>, %arg5: memref<1x128xf32, #tpu.memory_space<vmem>>, %arg6: memref<128x128xbf16, #tpu.memory_space<vmem>>, %arg7: memref<1x128xf32, #tpu.memory_space<vmem>>, %arg8: memref<16x128xf32, #tpu.memory_space<vmem>>) attributes {dimension_semantics = [#tpu.dimension_semantics<parallel>], iteration_bounds = array<i64: 1>, scalar_prefetch = 0 : i64, scratch_operands = 0 : i64, tpu.core_type = #tpu.core_type<tc>, window_params = [{transform_indices = @transform_0, window_bounds = array<i64: 16, 640>}, {pipeline_mode = #tpu.pipeline_mode<synchronous>, transform_indices = @transform_1, window_bounds = array<i64: 640, 256>}, {pipeline_mode = #tpu.pipeline_mode<synchronous>, transform_indices = @transform_2, window_bounds = array<i64: 1, 256>}, {pipeline_mode = #tpu.pipeline_mode<synchronous>, transform_indices = @transform_3, window_bounds = array<i64: 256, 128>}, {pipeline_mode = #tpu.pipeline_mode<synchronous>, transform_indices = @transform_4, window_bounds = array<i64: 1, 128>}, {pipeline_mode = #tpu.pipeline_mode<synchronous>, transform_indices = @transform_5, window_bounds = array<i64: 128, 128>}, {pipeline_mode = #tpu.pipeline_mode<synchronous>, transform_indices = @transform_6, window_bounds = array<i64: 1, 128>}, {transform_indices = @transform_7, window_bounds = array<i64: 16, 128>}]} {
    %c0 = arith.constant 0 : index
    %c0_0 = arith.constant 0 : index
    %0 = vector.load %arg1[%c0, %c0_0] : memref<16x640xbf16, #tpu.memory_space<vmem>>, vector<16x640xbf16>
    %c0_1 = arith.constant 0 : index
    %c0_2 = arith.constant 0 : index
    %1 = vector.load %arg2[%c0_1, %c0_2] : memref<640x256xbf16, #tpu.memory_space<vmem>>, vector<640x256xbf16>
    %cst = arith.constant dense<0.000000e+00> : vector<16x256xf32>
    %2 = tpu.matmul %0, %1, %cst {dimension_numbers = #tpu.dot_dimension_numbers<[1], [0], [0], [1], [0, 0, 1, 1], [], []>} : vector<16x640xbf16>, vector<640x256xbf16>, vector<16x256xf32> -> vector<16x256xf32>
    %c0_3 = arith.constant 0 : index
    %c0_4 = arith.constant 0 : index
    %3 = vector.load %arg3[%c0_3, %c0_4] : memref<1x256xf32, #tpu.memory_space<vmem>>, vector<1x256xf32>
    %4 = vector.broadcast %3 : vector<1x256xf32> to vector<16x256xf32>
    %5 = arith.addf %2, %4 : vector<16x256xf32>
    %cst_5 = arith.constant 0.000000e+00 : f32
    %6 = vector.broadcast %cst_5 : f32 to vector<16x256xf32>
    %7 = arith.maximumf %5, %6 : vector<16x256xf32>
    %8 = arith.truncf %7 : vector<16x256xf32> to vector<16x256xbf16>
    %c0_6 = arith.constant 0 : index
    %c0_7 = arith.constant 0 : index
    %9 = vector.load %arg4[%c0_6, %c0_7] : memref<256x128xbf16, #tpu.memory_space<vmem>>, vector<256x128xbf16>
    %cst_8 = arith.constant dense<0.000000e+00> : vector<16x128xf32>
    %10 = tpu.matmul %8, %9, %cst_8 {dimension_numbers = #tpu.dot_dimension_numbers<[1], [0], [0], [1], [0, 0, 1, 1], [], []>} : vector<16x256xbf16>, vector<256x128xbf16>, vector<16x128xf32> -> vector<16x128xf32>
    %c0_9 = arith.constant 0 : index
    %c0_10 = arith.constant 0 : index
    %11 = vector.load %arg5[%c0_9, %c0_10] : memref<1x128xf32, #tpu.memory_space<vmem>>, vector<1x128xf32>
    %12 = vector.broadcast %11 : vector<1x128xf32> to vector<16x128xf32>
    %13 = arith.addf %10, %12 : vector<16x128xf32>
    %cst_11 = arith.constant 0.000000e+00 : f32
    %14 = vector.broadcast %cst_11 : f32 to vector<16x128xf32>
    %15 = arith.maximumf %13, %14 : vector<16x128xf32>
    %16 = arith.truncf %15 : vector<16x128xf32> to vector<16x128xbf16>
    %c0_12 = arith.constant 0 : index
    %c0_13 = arith.constant 0 : index
    %17 = vector.load %arg6[%c0_12, %c0_13] : memref<128x128xbf16, #tpu.memory_space<vmem>>, vector<128x128xbf16>
    %cst_14 = arith.constant dense<0.000000e+00> : vector<16x128xf32>
    %18 = tpu.matmul %16, %17, %cst_14 {dimension_numbers = #tpu.dot_dimension_numbers<[1], [0], [0], [1], [0, 0, 1, 1], [], []>} : vector<16x128xbf16>, vector<128x128xbf16>, vector<16x128xf32> -> vector<16x128xf32>
    %c0_15 = arith.constant 0 : index
    %c0_16 = arith.constant 0 : index
    %19 = vector.load %arg7[%c0_15, %c0_16] : memref<1x128xf32, #tpu.memory_space<vmem>>, vector<1x128xf32>
    %20 = vector.broadcast %19 : vector<1x128xf32> to vector<16x128xf32>
    %21 = arith.addf %18, %20 : vector<16x128xf32>
    %c0_17 = arith.constant 0 : index
    %c0_18 = arith.constant 0 : index
    %22 = vector.load %arg8[%c0_17, %c0_18] : memref<16x128xf32, #tpu.memory_space<vmem>>, vector<16x128xf32>
    tpu.vector_store %arg8[%c0_17, %c0_18], %21 {strides = array<i32>} : memref<16x128xf32, #tpu.memory_space<vmem>>, vector<16x128xf32>,
    return
  }
  func.func @transform_0(%arg0: i32) -> (i32, i32) {
    %c0_i32 = arith.constant 0 : i32
    %c0_i32_0 = arith.constant 0 : i32
    return %arg0, %c0_i32 : i32, i32
  }
  func.func @transform_1(%arg0: i32) -> (i32, i32) {
    %c0_i32 = arith.constant 0 : i32
    %c0_i32_0 = arith.constant 0 : i32
    %c0_i32_1 = arith.constant 0 : i32
    return %c0_i32, %c0_i32_0 : i32, i32
  }
  func.func @transform_2(%arg0: i32) -> (i32, i32) {
    %c0_i32 = arith.constant 0 : i32
    %c0_i32_0 = arith.constant 0 : i32
    %c0_i32_1 = arith.constant 0 : i32
    return %c0_i32, %c0_i32_0 : i32, i32
  }
  func.func @transform_3(%arg0: i32) -> (i32, i32) {
    %c0_i32 = arith.constant 0 : i32
    %c0_i32_0 = arith.constant 0 : i32
    %c0_i32_1 = arith.constant 0 : i32
    return %c0_i32, %c0_i32_0 : i32, i32
  }
  func.func @transform_4(%arg0: i32) -> (i32, i32) {
    %c0_i32 = arith.constant 0 : i32
    %c0_i32_0 = arith.constant 0 : i32
    %c0_i32_1 = arith.constant 0 : i32
    return %c0_i32, %c0_i32_0 : i32, i32
  }
  func.func @transform_5(%arg0: i32) -> (i32, i32) {
    %c0_i32 = arith.constant 0 : i32
    %c0_i32_0 = arith.constant 0 : i32
    %c0_i32_1 = arith.constant 0 : i32
    return %c0_i32, %c0_i32_0 : i32, i32
  }
  func.func @transform_6(%arg0: i32) -> (i32, i32) {
    %c0_i32 = arith.constant 0 : i32
    %c0_i32_0 = arith.constant 0 : i32
    %c0_i32_1 = arith.constant 0 : i32
    return %c0_i32, %c0_i32_0 : i32, i32
  }
  func.func @transform_7(%arg0: i32) -> (i32, i32) {
    %c0_i32 = arith.constant 0 : i32
    %c0_i32_0 = arith.constant 0 : i32
    return %arg0, %c0_i32 : i32, i32
  }
}

</mosaic_0001>

<bundles_post_ra>
// kernel: tpu_custom_call.1
= control target key start
LH: loop header
LB: loop body
LE: loop exit
PB: predicated region body
PF: predicated region fallthrough
CT: control target
= control target key end

     0   :  { %12 = vsyncpa [#allocation3], 0  ;;  %s1640_s0 = inlined_call_operand.hbm [shape: bf16[16,640], index: 0, kind: input, shape index: {}]   ;;  %s1641_s1 = inlined_call_operand.hbm [shape: bf16[640,256], index: 1, kind: input, shape index: {}]   ;;  %s1642_s2 = inlined_call_operand.vmem [shape: f32[1,256], index: 2, kind: input, shape index: {}]   ;;  %s1643_s3 = inlined_call_operand.hbm [shape: bf16[256,128], index: 3, kind: input, shape index: {}]   ;;  %s1644_s4 = inlined_call_operand.vmem [shape: f32[1,128], index: 4, kind: input, shape index: {}]   ;;  %s1645_s5 = inlined_call_operand.hbm [shape: bf16[128,128], index: 5, kind: input, shape index: {}]   ;;  %s1646_s6 = inlined_call_operand.vmem [shape: f32[1,128], index: 6, kind: input, shape index: {}]   ;;  %s1647_s7 = inlined_call_operand.hbm [shape: f32[16,128], index: 7, kind: output, shape index: {}]  }
   0x1   :  { %13 = vsyncpa [#allocation6], 0 }
   0x2   :  { %14 = vsyncpa [#allocation9], 0 }
   0x3   :  { %15 = vsyncpa [#allocation4], 0  ;;  %s1511_s24 = smov [#allocation5]   ;;  %s1393_s28 = scalar_lea.hbm %s1641_s1, 10240 }
   0x4   :  { %s33_s25 = sshll.u32 %s1511_s24, 4  ;;  %p1394_p0 = scmp.ne.s32.totalorder %s1641_s1, %s1393_s28  ;;  %s34_s25 = int_to_ptr.vmem [resolvable:$true] %s33_s25 }
   0x5   :  { %p1397_p1 = scmp.lt.u32.totalorder %s1393_s28, %s1641_s1 }
   0x7   :  { %p1399_p2 = pnand %p1397_p1, %p1394_p0 }
   0x9   :  { %1402 = shalt.err (!%p1399_p2)
}
   0xa   :  { %s1403_s10 = scalar_lea.vmem %s34_s25, 10240  ;;  %p1408_p4 = scmp.lt.s32.totalorder %s34_s25, %s34_s25 }
   0xb   :  { %p1404_p3 = scmp.ne.s32.totalorder %s34_s25, %s1403_s10  ;;  %p1409_p5 = scmp.lt.s32.totalorder %s1403_s10, %s1403_s10 }
   0xd   :  { %p1410_p6 = por %p1409_p5, %p1408_p4 }
   0xf   :  { %p1411_p7 = pnand %p1410_p6, %p1404_p3 }
  0x11   :  { %1414 = shalt.err (!%p1411_p7)
}
  0x12   :  { %s1512_s11 = smov 128   ;;  %s1513_s12 = smov 8  }
  0x13   :  { %39 = dma.hbm_to_vmem [thread:$0]  %s1641_s1, 10240, %s34_s25, [#allocation6], %s1512_s11, %s1512_s11, %s1513_s12  }
  0x14   :  { %s1514_s15 = smov [#allocation2]   ;;  %s1415_s19 = scalar_lea.hbm %s1640_s0, 640 }
  0x15   :  { %s21_s16 = sshll.u32 %s1514_s15, 4  ;;  %p1416_p8 = scmp.ne.s32.totalorder %s1640_s0, %s1415_s19  ;;  %s22_s16 = int_to_ptr.vmem [resolvable:$true] %s21_s16 }
  0x16   :  { %p1419_p9 = scmp.lt.u32.totalorder %s1415_s19, %s1640_s0 }
  0x18   :  { %p1421_p10 = pnand %p1419_p9, %p1416_p8 }
  0x1a   :  { %1424 = shalt.err (!%p1421_p10)
}
  0x1b   :  { %s1425_s24 = scalar_lea.vmem %s22_s16, 640  ;;  %p1430_p12 = scmp.lt.s32.totalorder %s22_s16, %s22_s16 }
  0x1c   :  { %p1426_p11 = scmp.ne.s32.totalorder %s22_s16, %s1425_s24  ;;  %p1431_p13 = scmp.lt.s32.totalorder %s1425_s24, %s1425_s24 }
  0x1e   :  { %p1432_p0 = por %p1431_p13, %p1430_p12 }
  0x20   :  { %p1433_p1 = pnand %p1432_p0, %p1426_p11 }
  0x22   :  { %1436 = shalt.err (!%p1433_p1)
}
  0x23   :  { %s1515_s1 = smov 320   ;;  %s1516_s25 = smov 20  }
  0x24   :  { %27 = dma.hbm_to_vmem [thread:$0]  %s1640_s0, 640, %s22_s16, [#allocation3], %s1515_s1, %s1515_s1, %s1516_s25  }
  0x25   :  { %s1517_s28 = smov [#allocation7]   ;;  %s1437_s9 = scalar_lea.hbm %s1643_s3, 2048 }
  0x26   :  { %s47_s29 = sshll.u32 %s1517_s28, 4  ;;  %p1438_p2 = scmp.ne.s32.totalorder %s1643_s3, %s1437_s9  ;;  %s48_s29 = int_to_ptr.vmem [resolvable:$true] %s47_s29 }
  0x27   :  { %p1441_p3 = scmp.lt.u32.totalorder %s1437_s9, %s1643_s3 }
  0x29   :  { %p1443_p4 = pnand %p1441_p3, %p1438_p2 }
  0x2b   :  { %1446 = shalt.err (!%p1443_p4)
}
  0x2c   :  { %s1447_s17 = scalar_lea.vmem %s48_s29, 2048  ;;  %p1452_p6 = scmp.lt.s32.totalorder %s48_s29, %s48_s29 }
  0x2d   :  { %p1448_p5 = scmp.ne.s32.totalorder %s48_s29, %s1447_s17  ;;  %p1453_p7 = scmp.lt.s32.totalorder %s1447_s17, %s1447_s17 }
  0x2f   :  { %p1454_p8 = por %p1453_p7, %p1452_p6 }
  0x31   :  { %p1455_p9 = pnand %p1454_p8, %p1448_p5 }
  0x33   :  { %1458 = shalt.err (!%p1455_p9)
}
  0x34   :  { %s1518_s0 = smov 64   ;;  %s1519_s16 = smov 4  }
  0x35   :  { %53 = dma.hbm_to_vmem [thread:$0]  %s1643_s3, 2048, %s48_s29, [#allocation6], %s1518_s0, %s1518_s0, %s1519_s16  }
  0x36   :  { %s1520_s20 = smov [#allocation8]   ;;  %s1459_s24 = scalar_lea.hbm %s1645_s5, 1024 }
  0x37   :  { %s61_s21 = sshll.u32 %s1520_s20, 4  ;;  %p1460_p10 = scmp.ne.s32.totalorder %s1645_s5, %s1459_s24  ;;  %s62_s21 = int_to_ptr.vmem [resolvable:$true] %s61_s21 }
  0x38   :  { %p1463_p11 = scmp.lt.u32.totalorder %s1459_s24, %s1645_s5 }
  0x3a   :  { %p1465_p12 = pnand %p1463_p11, %p1460_p10 }
  0x3c   :  { %1468 = shalt.err (!%p1465_p12)
}
  0x3d   :  { %s1469_s28 = scalar_lea.vmem %s62_s21, 1024  ;;  %p1474_p0 = scmp.lt.s32.totalorder %s62_s21, %s62_s21 }
  0x3e   :  { %p1470_p13 = scmp.ne.s32.totalorder %s62_s21, %s1469_s28  ;;  %p1475_p1 = scmp.lt.s32.totalorder %s1469_s28, %s1469_s28 }
  0x40   :  { %p1476_p2 = por %p1475_p1, %p1474_p0 }
  0x42   :  { %p1477_p3 = pnand %p1476_p2, %p1470_p13 }
  0x44   :  { %1480 = shalt.err (!%p1477_p3)
}
  0x45   :  { %67 = dma.hbm_to_vmem [thread:$0]  %s1645_s5, 1024, %s62_s21, [#allocation9], %s1518_s0, %s1518_s0, %s1519_s16  }
  0x46   :  { %1503 = dma.done.wait [#allocation3], 640  }
  0x47   :  { %1504 = vsyncadd [#allocation3], 4294966656 }
  0x48   :  { %1505 = dma.done.wait [#allocation6], 12288  }
  0x49   :  { %1506 = vsyncadd [#allocation6], 4294955008 }
  0x4a   :  { %1507 = dma.done.wait [#allocation9], 1024  }
  0x4b   :  { %1508 = vsyncadd [#allocation9], 4294966272  ;;  %v1242_v0 = vld [vmem:[#allocation5 + $0x104] ss:$8 sps:$4 sm:$0xff]   ;;  %v1244_v1 = vld [vmem:[#allocation5 + $0x100] ss:$8 sps:$4 sm:$0xff]  }
  0x4c   :  { %650 = vmatprep.subr.bf16.mxu0 %v1242_v0  ;;  %v1245_v2 = vld [vmem:[#allocation5 + $0x114] ss:$8 sps:$4 sm:$0xff]   ;;  %v1247_v3 = vld [vmem:[#allocation5 + $0x110] ss:$8 sps:$4 sm:$0xff]   ;;  %v1248_v4 = vld [vmem:[#allocation5 + $0x124] ss:$8 sps:$4 sm:$0xff]  }
  0x4d   :  { %651 = vmatpush1.bf16.msra.mxu0 %v1244_v1  ;;  %v1250_v5 = vld [vmem:[#allocation5 + $0x120] ss:$8 sps:$4 sm:$0xff]   ;;  %v1251_v6 = vld [vmem:[#allocation5 + $0x134] ss:$8 sps:$4 sm:$0xff]   ;;  %v1263_v7 = vld [vmem:[#allocation5 + $0x4] ss:$8 sps:$4 sm:$0xff]  }
  0x4e   :  { %652 = vmatprep.subr.bf16.mxu0 %v1245_v2  ;;  %v1265_v8 = vld [vmem:[#allocation5] ss:$8 sps:$4 sm:$0xff]   ;;  %v1253_v9 = vld [vmem:[#allocation5 + $0x130] ss:$8 sps:$4 sm:$0xff]   ;;  %v1254_v10 = vld [vmem:[#allocation5 + $0x144] ss:$8 sps:$4 sm:$0xff]   ;;  %607 = vmatprep.subr.bf16.mxu1 %v1263_v7 }
  0x4f   :  { %v1269_v11 = vld [vmem:[#allocation5 + $0x14] ss:$8 sps:$4 sm:$0xff]   ;;  %608 = vmatpush1.bf16.msra.mxu1 %v1265_v8  ;;  %v1271_v12 = vld [vmem:[#allocation5 + $0x10] ss:$8 sps:$4 sm:$0xff]   ;;  %v1256_v13 = vld [vmem:[#allocation5 + $0x140] ss:$8 sps:$4 sm:$0xff]  }
  0x50   :  { %609 = vmatprep.subr.bf16.mxu1 %v1269_v11  ;;  %v1275_v14 = vld [vmem:[#allocation5 + $0x24] ss:$8 sps:$4 sm:$0xff]   ;;  %v1257_v15 = vld [vmem:[#allocation5 + $0x154] ss:$8 sps:$4 sm:$0xff]   ;;  %v1277_v16 = vld [vmem:[#allocation5 + $0x20] ss:$8 sps:$4 sm:$0xff]  }
  0x51   :  { %653 = vmatpush1.bf16.msra.mxu0 %v1247_v3  ;;  %v1281_v17 = vld [vmem:[#allocation5 + $0x34] ss:$8 sps:$4 sm:$0xff]   ;;  %v1259_v18 = vld [vmem:[#allocation5 + $0x150] ss:$8 sps:$4 sm:$0xff]   ;;  %v1260_v19 = vld [vmem:[#allocation5 + $0x164] ss:$8 sps:$4 sm:$0xff]  }
  0x52   :  { %654 = vmatprep.subr.bf16.mxu0 %v1248_v4  ;;  %v1283_v20 = vld [vmem:[#allocation5 + $0x30] ss:$8 sps:$4 sm:$0xff]   ;;  %v1287_v21 = vld [vmem:[#allocation5 + $0x44] ss:$8 sps:$4 sm:$0xff]   ;;  %v1262_v22 = vld [vmem:[#allocation5 + $0x160] ss:$8 sps:$4 sm:$0xff]  }
  0x53   :  { %610 = vmatpush1.bf16.msra.mxu1 %v1271_v12  ;;  %v1266_v23 = vld [vmem:[#allocation5 + $0x174] ss:$8 sps:$4 sm:$0xff]   ;;  %v1289_v24 = vld [vmem:[#allocation5 + $0x40] ss:$8 sps:$4 sm:$0xff]   ;;  %v1268_v26 = vld [vmem:[#allocation5 + $0x170] ss:$8 sps:$4 sm:$0xff]  }
  0x54   :  { %611 = vmatprep.subr.bf16.mxu1 %v1275_v14  ;;  %v1293_v25 = vld [vmem:[#allocation5 + $0x54] ss:$8 sps:$4 sm:$0xff]   ;;  %v1272_v27 = vld [vmem:[#allocation5 + $0x184] ss:$8 sps:$4 sm:$0xff]   ;;  %v1295_v28 = vld [vmem:[#allocation5 + $0x50] ss:$8 sps:$4 sm:$0xff]  }
  0x55   :  { %655 = vmatpush1.bf16.msra.mxu0 %v1250_v5  ;;  %v1299_v29 = vld [vmem:[#allocation5 + $0x64] ss:$8 sps:$4 sm:$0xff]   ;;  %v1274_v30 = vld [vmem:[#allocation5 + $0x180] ss:$8 sps:$4 sm:$0xff]   ;;  %v1278_v31 = vld [vmem:[#allocation5 + $0x194] ss:$8 sps:$4 sm:$0xff]  }
  0x56   :  { %656 = vmatprep.subr.bf16.mxu0 %v1251_v6  ;;  %v1301_v32 = vld [vmem:[#allocation5 + $0x60] ss:$8 sps:$4 sm:$0xff]   ;;  %v1305_v33 = vld [vmem:[#allocation5 + $0x74] ss:$8 sps:$4 sm:$0xff]   ;;  %v1280_v34 = vld [vmem:[#allocation5 + $0x190] ss:$8 sps:$4 sm:$0xff]  }
  0x57   :  { %612 = vmatpush1.bf16.msra.mxu1 %v1277_v16  ;;  %v1322_v35 = vld [vmem:[#allocation2 + $0xc] ss:$20 sps:$4 sm:$0xff]   ;;  %v1286_v39 = vld [vmem:[#allocation5 + $0x1a0] ss:$8 sps:$4 sm:$0xff]   ;;  %v1290_v40 = vld [vmem:[#allocation5 + $0x1b4] ss:$8 sps:$4 sm:$0xff]  }
  0x58   :  { %613 = vmatprep.subr.bf16.mxu1 %v1281_v17  ;;  %v1284_v36 = vld [vmem:[#allocation5 + $0x1a4] ss:$8 sps:$4 sm:$0xff]   ;;  %v1307_v37 = vld [vmem:[#allocation5 + $0x70] ss:$8 sps:$4 sm:$0xff]   ;;  %682 = vmatprep.mubr.bf16.mxu0 %v1322_v35  ;;  %v1313_v41 = vld [vmem:[#allocation5 + $0x80] ss:$8 sps:$4 sm:$0xff]  }
  0x59   :  { %657 = vmatpush1.bf16.msra.mxu0 %v1253_v9  ;;  %v1311_v38 = vld [vmem:[#allocation5 + $0x84] ss:$8 sps:$4 sm:$0xff]   ;;  %v1317_v42 = vld [vmem:[#allocation5 + $0x94] ss:$8 sps:$4 sm:$0xff]   ;;  %v1292_v43 = vld [vmem:[#allocation5 + $0x1b0] ss:$8 sps:$4 sm:$0xff]  }
  0x5a   :  { %658 = vmatprep.subr.bf16.mxu0 %v1254_v10  ;;  %v1296_v44 = vld [vmem:[#allocation5 + $0x1c4] ss:$8 sps:$4 sm:$0xff]   ;;  %v1319_v45 = vld [vmem:[#allocation5 + $0x90] ss:$8 sps:$4 sm:$0xff]   ;;  %v1298_v47 = vld [vmem:[#allocation5 + $0x1c0] ss:$8 sps:$4 sm:$0xff]  }
  0x5b   :  { %614 = vmatpush1.bf16.msra.mxu1 %v1283_v20  ;;  %v1326_v46 = vld [vmem:[#allocation5 + $0xa4] ss:$8 sps:$4 sm:$0xff]   ;;  %v1302_v48 = vld [vmem:[#allocation5 + $0x1d4] ss:$8 sps:$4 sm:$0xff]   ;;  %v1328_v49 = vld [vmem:[#allocation5 + $0xa0] ss:$8 sps:$4 sm:$0xff]  }
  0x5c   :  { %615 = vmatprep.subr.bf16.mxu1 %v1287_v21  ;;  %v1332_v50 = vld [vmem:[#allocation5 + $0xb4] ss:$8 sps:$4 sm:$0xff]   ;;  %v1304_v51 = vld [vmem:[#allocation5 + $0x1d0] ss:$8 sps:$4 sm:$0xff]   ;;  %v1308_v52 = vld [vmem:[#allocation5 + $0x1e4] ss:$8 sps:$4 sm:$0xff]  }
  0x5d   :  { %659 = vmatpush1.bf16.msra.mxu0 %v1256_v13  ;;  %v1334_v53 = vld [vmem:[#allocation5 + $0xb0] ss:$8 sps:$4 sm:$0xff]   ;;  %v1338_v54 = vld [vmem:[#allocation5 + $0xc4] ss:$8 sps:$4 sm:$0xff]   ;;  %v1310_v56 = vld [vmem:[#allocation5 + $0x1e0] ss:$8 sps:$4 sm:$0xff]  }
  0x5e   :  { %660 = vmatprep.subr.bf16.mxu0 %v1257_v15  ;;  %v1364_v55 = vld [vmem:[#allocation2 + $0x4] ss:$20 sps:$4 sm:$0xff]   ;;  %v1340_v58 = vld [vmem:[#allocation5 + $0xc0] ss:$8 sps:$4 sm:$0xff]   ;;  %v1325_v62 = vld [vmem:[#allocation5 + $0x204] ss:$8 sps:$4 sm:$0xff]  }
  0x5f   :  { %616 = vmatpush1.bf16.msra.mxu1 %v1289_v24  ;;  %v1314_v57 = vld [vmem:[#allocation5 + $0x1f4] ss:$8 sps:$4 sm:$0xff]   ;;  %639 = vmatprep.mubr.bf16.mxu1 %v1364_v55  ;;  %v1316_v60 = vld [vmem:[#allocation5 + $0x1f0] ss:$8 sps:$4 sm:$0xff]   ;;  %v1323_v63 = vld [vmem:[#allocation5 + $0x200] ss:$8 sps:$4 sm:$0xff]  }
  0x60   :  { %617 = vmatprep.subr.bf16.mxu1 %v1293_v25  ;;  %v1344_v59 = vld [vmem:[#allocation5 + $0xd4] ss:$8 sps:$4 sm:$0xff]   ;;  %v1346_v0 = vld [vmem:[#allocation5 + $0xd0] ss:$8 sps:$4 sm:$0xff]   ;;  %v1350_v1 = vld [vmem:[#allocation5 + $0xe4] ss:$8 sps:$4 sm:$0xff]  }
  0x61   :  { %661 = vmatpush1.bf16.msra.mxu0 %v1259_v18  ;;  %v1320_v61 = vld [vmem:[#allocation2 + $0x8] ss:$20 sps:$4 sm:$0xff]   ;;  %v1329_v4 = vld [vmem:[#allocation5 + $0x210] ss:$8 sps:$4 sm:$0xff]   ;;  %v1337_v6 = vld [vmem:[#allocation5 + $0x224] ss:$8 sps:$4 sm:$0xff]  }
  0x62   :  { %662 = vmatprep.subr.bf16.mxu0 %v1260_v19  ;;  %v1331_v2 = vld [vmem:[#allocation5 + $0x214] ss:$8 sps:$4 sm:$0xff]   ;;  %v1352_v3 = vld [vmem:[#allocation5 + $0xe0] ss:$8 sps:$4 sm:$0xff]   ;;  %v1358_v7 = vld [vmem:[#allocation5 + $0xf0] ss:$8 sps:$4 sm:$0xff]  }
  0x63   :  { %618 = vmatpush1.bf16.msra.mxu1 %v1295_v28  ;;  %v1356_v5 = vld [vmem:[#allocation5 + $0xf4] ss:$8 sps:$4 sm:$0xff]   ;;  %v1521_v8 = vmov 0   ;;  %v1369_v9 = vld [vmem:[#allocation7 + $0x40] sm:$0xff]   ;;  %v1362_v12 = vld [vmem:[#allocation2] ss:$20 sps:$4 sm:$0xff]  }
  0x64   :  { %619 = vmatprep.subr.bf16.mxu1 %v1299_v29  ;;  %v1335_v10 = vld [vmem:[#allocation5 + $0x220] ss:$8 sps:$4 sm:$0xff]   ;;  %v1343_v11 = vld [vmem:[#allocation5 + $0x234] ss:$8 sps:$4 sm:$0xff]   ;;  %v1341_v15 = vld [vmem:[#allocation5 + $0x230] ss:$8 sps:$4 sm:$0xff]  }
  0x65   :  { %663 = vmatpush1.bf16.msra.mxu0 %v1262_v22  ;;  %v1370_v13 = vld [vmem:[#allocation7] sm:$0xff]   ;;  %v1371_v14 = vld [vmem:[#allocation7 + $0x48] sm:$0xff]   ;;  %v1373_v18 = vld [vmem:[#allocation7 + $0x50] sm:$0xff]   ;;  %vm1523_vm0 = vmmov 0   ;;  %s1524_s13 = smov [#allocation10]  }
  0x66   :  { %664 = vmatprep.subr.bf16.mxu0 %v1266_v23  ;;  %v1349_v16 = vld [vmem:[#allocation5 + $0x244] ss:$8 sps:$4 sm:$0xff]   ;;  %v1347_v19 = vld [vmem:[#allocation5 + $0x240] ss:$8 sps:$4 sm:$0xff]   ;;  %v1355_v20 = vld [vmem:[#allocation5 + $0x254] ss:$8 sps:$4 sm:$0xff]  }
  0x67   :  { %620 = vmatpush1.bf16.msra.mxu1 %v1301_v32  ;;  %v1372_v17 = vld [vmem:[#allocation7 + $0x8] sm:$0xff]   ;;  %v1374_v21 = vld [vmem:[#allocation7 + $0x10] sm:$0xff]   ;;  %v1375_v22 = vld [vmem:[#allocation7 + $0x58] sm:$0xff]   ;;  %s1040_s14 = sshll.u32 %s1524_s13, 4  ;;  %s1041_s14 = int_to_ptr.vmem [resolvable:$true] %s1040_s14 }
  0x68   :  { %621 = vmatprep.subr.bf16.mxu1 %v1305_v33  ;;  %v1353_v23 = vld [vmem:[#allocation5 + $0x250] ss:$8 sps:$4 sm:$0xff]   ;;  %v1361_v24 = vld [vmem:[#allocation5 + $0x264] ss:$8 sps:$4 sm:$0xff]   ;;  %v1368_v29 = vld [vmem:[#allocation2 + $0x10] ss:$20 sps:$4 sm:$0xff]   ;;  %p1486_p5 = scmp.lt.s32.totalorder %s1041_s14, %s1041_s14 }
  0x69   :  { %665 = vmatpush1.bf16.msra.mxu0 %v1268_v26  ;;  %v1376_v25 = vld [vmem:[#allocation7 + $0x18] sm:$0xff]   ;;  %v1359_v26 = vld [vmem:[#allocation5 + $0x260] ss:$8 sps:$4 sm:$0xff]   ;;  %v1382_v35 = vld [vmem:[#allocation7 + $0x30] sm:$0xff]  }
  0x6a   :  { %666 = vmatprep.subr.bf16.mxu0 %v1272_v27  ;;  %v1367_v27 = vld [vmem:[#allocation5 + $0x274] ss:$8 sps:$4 sm:$0xff]   ;;  %v1365_v28 = vld [vmem:[#allocation5 + $0x270] ss:$8 sps:$4 sm:$0xff]   ;;  %v1379_v32 = vld [vmem:[#allocation7 + $0x68] sm:$0xff]  }
  0x6b   :  { %622 = vmatpush1.bf16.msra.mxu1 %v1307_v37  ;;  %v1380_v33 = vld [vmem:[#allocation7 + $0x28] sm:$0xff]   ;;  %v1384_v37 = vld [vmem:[#allocation7 + $0x38] sm:$0xff]  }
  0x6c   :  { %623 = vmatprep.subr.bf16.mxu1 %v1311_v38  ;;  %v1522_v38 = vmov 0.0  }
  0x6d   :  { %667 = vmatpush1.bf16.msra.mxu0 %v1274_v30  ;;  %v1377_v30 = vld [vmem:[#allocation7 + $0x60] sm:$0xff]  }
  0x6e   :  { %668 = vmatprep.subr.bf16.mxu0 %v1278_v31  ;;  %v1378_v31 = vld [vmem:[#allocation7 + $0x20] sm:$0xff]  }
  0x6f   :  { %624 = vmatpush1.bf16.msra.mxu1 %v1313_v41 }
  0x70   :  { %625 = vmatprep.subr.bf16.mxu1 %v1317_v42  ;;  %v171_v42 = vlaneseq }
  0x71   :  { %669 = vmatpush1.bf16.msra.mxu0 %v1280_v34  ;;  %v1381_v34 = vld [vmem:[#allocation7 + $0x70] sm:$0xff]  }
  0x72   :  { %670 = vmatprep.subr.bf16.mxu0 %v1284_v36  ;;  %v1383_v36 = vld [vmem:[#allocation7 + $0x78] sm:$0xff]  }
  0x73   :  { %626 = vmatpush1.bf16.msra.mxu1 %v1319_v45 }
  0x74   :  { %627 = vmatprep.subr.bf16.mxu1 %v1326_v46  ;;  %v169_v46 = vld [vmem:[%s1642_s2] sm:$0x3] }
  0x75   :  { %671 = vmatpush1.bf16.msra.mxu0 %v1286_v39 }
  0x76   :  { %672 = vmatprep.subr.bf16.mxu0 %v1290_v40 }
  0x77   :  { %628 = vmatpush1.bf16.msra.mxu1 %v1328_v49 }
  0x78   :  { %629 = vmatprep.subr.bf16.mxu1 %v1332_v50 }
  0x79   :  { %673 = vmatpush1.bf16.msra.mxu0 %v1292_v43 }
  0x7a   :  { %674 = vmatprep.subr.bf16.mxu0 %v1296_v44  ;;  %v172_v44 = vshrl.u32 %v171_v42, 7 }
  0x7b   :  { %630 = vmatpush1.bf16.msra.mxu1 %v1334_v53 }
  0x7c   :  { %631 = vmatprep.subr.bf16.mxu1 %v1338_v54  ;;  %v173_v45 = vsub.s32 0, %v172_v44 }
  0x7d   :  { %675 = vmatpush1.bf16.msra.mxu0 %v1298_v47  ;;  %v177_v47 = vsub.s32 1, %v172_v44 }
  0x7e   :  { %676 = vmatprep.subr.bf16.mxu0 %v1302_v48  ;;  %v174_v48 = vrot.slane %v169_v46, %v173_v45 }
  0x7f   :  { %632 = vmatpush1.bf16.msra.mxu1 %v1340_v58  ;;  %v178_v49 = vrot.slane %v169_v46, %v177_v47 }
  0x80   :  { %633 = vmatprep.subr.bf16.mxu1 %v1344_v59 }
  0x81   :  { %677 = vmatpush1.bf16.msra.mxu0 %v1304_v51 }
  0x82   :  { %678 = vmatprep.subr.bf16.mxu0 %v1308_v52 }
  0x83   :  { %634 = vmatpush1.bf16.msra.mxu1 %v1346_v0 }
  0x84   :  { %635 = vmatprep.subr.bf16.mxu1 %v1350_v1 }
  0x85   :  { %679 = vmatpush1.bf16.msra.mxu0 %v1310_v56 }
  0x86   :  { %680 = vmatprep.subr.bf16.mxu0 %v1314_v57 }
  0x87   :  { %636 = vmatpush1.bf16.msra.mxu1 %v1352_v3 }
  0x88   :  { %637 = vmatprep.subr.bf16.mxu1 %v1356_v5  ;;  %v1386_v5 = vld [vmem:[#allocation8 + $0x8] sm:$0xff]  }
  0x89   :  { %681 = vmatpush1.bf16.msra.mxu0 %v1316_v60 }
  0x8a   :  { %693 = vmatprep.subr.bf16.mxu0 %v1325_v62 }
  0x8b   :  { %638 = vmatpush1.bf16.msra.mxu1 %v1358_v7  ;;  %v1388_v7 = vld [vmem:[#allocation8 + $0x18] sm:$0xff]  }
  0x8c   :  { %683 = vmatmul.mubr.bf16.vlgmr.msra.gmra.mrb[0].mxu0 %v1320_v61  ;;  %1165 = vmatprep.subr.bf16.mxu1 %v1369_v9  ;;  %v1390_v9 = vld [vmem:[#allocation8 + $0x28] sm:$0xff]  }
  0x8d   :  { %694 = vmatpush1.bf16.msra.mxu0 %v1323_v63  ;;  %725 = vmatprep.mubr.bf16.mxu0 %v1521_v8  ;;  %v1389_v8 = vld [vmem:[#allocation8 + $0x20] sm:$0xff]  }
  0x8e   :  { %695 = vmatprep.subr.bf16.mxu0 %v1331_v2  ;;  %640 = vmatmul.mubr.bf16.vlgmr.msra.gmra.mrb[0].mxu1 %v1362_v12 }
  0x8f   :  { %1166 = vmatpush3.bf16.msra.mxu1 %v1370_v13  ;;  %v1139_v13 = vld [vmem:[%s1644_s4] ss:$0 sm:$0xff]  ;;  %s1481_s4 = scalar_lea.vmem %s1041_s14, 256 }
  0x90   :  { %1167 = vmatprep.subr.bf16.mxu1 %v1371_v14  ;;  %p1482_p4 = scmp.ne.s32.totalorder %s1041_s14, %s1481_s4  ;;  %p1487_p6 = scmp.lt.s32.totalorder %s1481_s4, %s1481_s4 }
  0x91   :  { %696 = vmatpush1.bf16.msra.mxu0 %v1329_v4  ;;  %v1385_v4 = vld [vmem:[#allocation8] sm:$0xff]  }
  0x92   :  { %697 = vmatprep.subr.bf16.mxu0 %v1337_v6  ;;  %v1387_v6 = vld [vmem:[#allocation8 + $0x10] sm:$0xff]   ;;  %p1488_p7 = por %p1487_p6, %p1486_p5 }
  0x93   :  { %1168 = vmatpush3.bf16.msra.mxu1 %v1372_v17 }
  0x94   :  { %1169 = vmatprep.subr.bf16.mxu1 %v1373_v18  ;;  %p1489_p8 = pnand %p1488_p7, %p1482_p4 }
  0x95   :  { %698 = vmatpush1.bf16.msra.mxu0 %v1335_v10  ;;  %v1391_v10 = vld [vmem:[#allocation8 + $0x30] sm:$0xff]  }
  0x96   :  { %699 = vmatprep.subr.bf16.mxu0 %v1343_v11  ;;  %v1392_v11 = vld [vmem:[#allocation8 + $0x38] sm:$0xff]  }
  0x97   :  { %1170 = vmatpush3.bf16.msra.mxu1 %v1374_v21 }
  0x98   :  { %1171 = vmatprep.subr.bf16.mxu1 %v1375_v22 }
  0x99   :  { %700 = vmatpush1.bf16.msra.mxu0 %v1341_v15 }
  0x9a   :  { %701 = vmatprep.subr.bf16.mxu0 %v1349_v16 }
  0x9b   :  { %1172 = vmatpush3.bf16.msra.mxu1 %v1376_v25 }
  0x9c   :  { %1173 = vmatprep.subr.bf16.mxu1 %v1377_v30 }
  0x9d   :  { %702 = vmatpush1.bf16.msra.mxu0 %v1347_v19 }
  0x9e   :  { %703 = vmatprep.subr.bf16.mxu0 %v1355_v20 }
  0x9f   :  { %1174 = vmatpush3.bf16.msra.mxu1 %v1378_v31 }
  0xa0   :  { %1175 = vmatprep.subr.bf16.mxu1 %v1379_v32 }
  0xa1   :  { %704 = vmatpush1.bf16.msra.mxu0 %v1353_v23 }
  0xa2   :  { %705 = vmatprep.subr.bf16.mxu0 %v1361_v24  ;;  %v1156_v24 = vld [vmem:[%s1646_s6] ss:$0 sm:$0xff] }
  0xa3   :  { %1176 = vmatpush3.bf16.msra.mxu1 %v1380_v33 }
  0xa4   :  { %1177 = vmatprep.subr.bf16.mxu1 %v1381_v34 }
  0xa5   :  { %706 = vmatpush1.bf16.msra.mxu0 %v1359_v26 }
  0xa6   :  { %707 = vmatprep.subr.bf16.mxu0 %v1367_v27 }
  0xa7   :  { %1178 = vmatpush3.bf16.msra.mxu1 %v1382_v35 }
  0xa8   :  { %1179 = vmatprep.subr.bf16.mxu1 %v1383_v36 }
  0xa9   :  { %708 = vmatpush1.bf16.msra.mxu0 %v1365_v28 }
  0xab   :  { %1180 = vmatpush3.bf16.msra.mxu1 %v1384_v37 }
  0xac   :  { %726 = vmatmul.mubr.bf16.vlgmr.msra.gmra.mrb[0].mxu0 %v1368_v29  ;;  %1196 = vmatprep.subr.bf16.mxu1 %v1522_v38 }
 0x161   :  { %v641_v39 = vpop.f32.mrb[0].mxu1 }
 0x162   :  { %v643_v40 = vpop.f32.mrb[1].mxu1  ;;  %v642_v50 = vadd.f32 %v641_v39, %v174_v48 }
 0x163   :  { %v645_v41 = vpop.f32.mrb[2].mxu1  ;;  %v644_v51 = vadd.f32 %v643_v40, %v178_v49 }
 0x164   :  { %v647_v43 = vpop.f32.mrb[3].mxu1  ;;  %v646_v53 = vadd.f32 %v645_v41, %v174_v48 }
 0x165   :  { %v648_v56 = vadd.f32 %v647_v43, %v178_v49 }
 0x17f   :  { %v727_v52 = vpop.f32.mrb[0].mxu0 }
 0x180   :  { %v1217_v54 = vadd.f32 %v727_v52, %v642_v50  ;;  %v729_v55 = vpop.f32.mrb[1].mxu0 }
 0x181   :  { %v1219_v57 = vadd.f32 %v729_v55, %v644_v51  ;;  %v731_v58 = vpop.f32.mrb[2].mxu0 }
 0x182   :  { %v1221_v59 = vadd.f32 %v731_v58, %v646_v53  ;;  %v733_v60 = vpop.f32.mrb[3].mxu0  ;;  %v736_v62 = vmax.f32 %v1217_v54, 0.0 }
 0x183   :  { %v1223_v61 = vadd.f32 %v733_v60, %v648_v56  ;;  %v737_v0 = vmax.f32 %v1219_v57, 0.0 }
 0x184   :  { %v738_v63 = vmax.f32 %v1221_v59, 0.0 }
 0x185   :  { %v739_v1 = vmax.f32 %v1223_v61, 0.0 }
 0x186   :  { %v740_v2 = vpack.c.bf16 %v738_v63, %v736_v62 }
 0x187   :  { %v741_v3 = vpack.c.bf16 %v739_v1, %v737_v0 }
 0x189   :  { %909 = vmatprep.mubr.bf16.mxu1 %v741_v3 }
 0x18a   :  { %910 = vmatmul.mubr.bf16.vlgmr.msra.gmra.mrb[4].mxu1 %v740_v2 }
 0x18b   :  { %1197 = vmatpush3.bf16.msra.mxu1 %v1385_v4  ;;  %1212 = vmatprep.mubr.msk.bf16.mxu1 %vm1523_vm0, %v1522_v38 }
 0x18c   :  { %1198 = vmatprep.subr.bf16.mxu1 %v1522_v38 }
 0x18f   :  { %1199 = vmatpush3.bf16.msra.mxu1 %v1386_v5 }
 0x190   :  { %1200 = vmatprep.subr.bf16.mxu1 %v1522_v38 }
 0x193   :  { %1201 = vmatpush3.bf16.msra.mxu1 %v1387_v6 }
 0x194   :  { %1202 = vmatprep.subr.bf16.mxu1 %v1522_v38 }
 0x197   :  { %1203 = vmatpush3.bf16.msra.mxu1 %v1388_v7 }
 0x198   :  { %1204 = vmatprep.subr.bf16.mxu1 %v1522_v38 }
 0x19b   :  { %1205 = vmatpush3.bf16.msra.mxu1 %v1389_v8 }
 0x19c   :  { %1206 = vmatprep.subr.bf16.mxu1 %v1522_v38 }
 0x19f   :  { %1207 = vmatpush3.bf16.msra.mxu1 %v1390_v9 }
 0x1a0   :  { %1208 = vmatprep.subr.bf16.mxu1 %v1522_v38 }
 0x1a3   :  { %1209 = vmatpush3.bf16.msra.mxu1 %v1391_v10 }
 0x1a4   :  { %1210 = vmatprep.subr.bf16.mxu1 %v1522_v38 }
 0x1a7   :  { %1211 = vmatpush3.bf16.msra.mxu1 %v1392_v11 }
 0x25d   :  { %v1181_v12 = vpop.f32.mrb[4].mxu1 }
 0x25e   :  { %v1182_v14 = vpop.f32.mrb[5].mxu1 }
 0x25f   :  { %v1183_v15 = vadd.f32 %v1182_v14, %v1181_v12  ;;  %v1184_v16 = vpop.f32.mrb[6].mxu1 }
 0x260   :  { %v1185_v17 = vpop.f32.mrb[7].mxu1 }
 0x261   :  { %v912_v18 = vadd.f32 %v1183_v15, %v1139_v13  ;;  %v1186_v19 = vadd.f32 %v1185_v17, %v1184_v16 }
 0x263   :  { %v915_v20 = vadd.f32 %v1186_v19, %v1139_v13  ;;  %v918_v21 = vmax.f32 %v912_v18, 0.0 }
 0x265   :  { %v919_v22 = vmax.f32 %v915_v20, 0.0 }
 0x267   :  { %v920_v23 = vpack.c.bf16 %v919_v22, %v918_v21 }
 0x269   :  { %1213 = vmatmul.mubr.bf16.vlgmr.msra.gmra.mrb[8].mxu1 %v920_v23 }
 0x33c   :  { %v1026_v25 = vpop.f32.mrb[8].mxu1 }
 0x33d   :  { %v1027_v26 = vadd.f32 %v1156_v24, %v1026_v25  ;;  %v1214_v27 = vpop.f32.mrb[9].mxu1 }
 0x33e   :  { %v1029_v28 = vpop.f32.mrb[10].mxu1 }
 0x33f   :  { %1033 = vst [vmem:[#allocation10] sm:$0xff] %v1027_v26  ;;  %v1030_v29 = vadd.f32 %v1156_v24, %v1029_v28  ;;  %v1215_v30 = vpop.f32.mrb[11].mxu1 }
 0x341   :  { %1034 = vst [vmem:[#allocation10 + $0x8] sm:$0xff] %v1030_v29 }
 0x342   :  { %1492 = shalt.err (!%p1489_p8)
}
 0x343   :  { %s1493_s17 = scalar_lea.hbm %s1647_s7, 256 }
 0x344   :  { %p1494_p9 = scmp.ne.s32.totalorder %s1647_s7, %s1493_s17  ;;  %p1497_p10 = scmp.lt.u32.totalorder %s1493_s17, %s1647_s7 }
 0x346   :  { %p1499_p11 = pnand %p1497_p10, %p1494_p9 }
 0x348   :  { %1502 = shalt.err (!%p1499_p11)
}
 0x349   :  { %1046 = dma.vmem_to_hbm [thread:$0]  %s1041_s14, 256, %s1647_s7, [#allocation4], %s1512_s11, %s1512_s11, %s1513_s12  }
 0x34a   :  { %1509 = dma.done.wait [#allocation4], 256  }
 0x34b   :  { %1510 = vsyncadd [#allocation4], 4294967040 }
 0x34c   :  { %1050 = vsyncpa [#allocation3], 1 }
 0x34d   :  { %1051 = vsyncpa [#allocation6], 1 }
 0x34e   :  { %1052 = vsyncpa [#allocation9], 1 }
 0x34f   :  { %1053 = vsyncpa [#allocation4], 1 }

</bundles_post_ra>
